<compile_context>
chip_gen: v7x
topology: tpu7x:2x2x1
jax: 0.10.0
libtpu: 0.0.40
codegen_flags: <defaults>
</compile_context>

<pallas_src>
import jax
import jax.numpy as jnp
from jax import lax
from jax.experimental import pallas as pl
from jax.experimental.pallas import tpu as pltpu


def _topk_gate_kernel(x_ref, w1_ref, p_ref, wg_ref, out_ref):
    # Native-dtype inputs, cast to f32 on the VPU (free; halves DMA for bf16).
    x = x_ref[...].astype(jnp.float32)                                    # [ts, A]
    w1 = w1_ref[...].astype(jnp.float32)                                  # [A, D]
    wg = wg_ref[...].astype(jnp.float32)                                  # [D, E]
    b1 = p_ref[0:1, :]                                                    # [1, D]
    gamma = p_ref[1:2, :]                                                 # [1, D]
    beta = p_ref[2:3, :]                                                  # [1, D]

    # --- tag_transform: Linear -> GELU(exact erf) -> LayerNorm(eps=1e-5) ---
    h = jnp.dot(x, w1, preferred_element_type=jnp.float32) + b1           # [ts, D]
    h = 0.5 * h * (1.0 + lax.erf(h * jnp.float32(0.70710678118654752)))
    mean = jnp.mean(h, axis=-1, keepdims=True)
    hc = h - mean                                                         # reused
    var = jnp.mean(hc * hc, axis=-1, keepdims=True)
    h = hc * lax.rsqrt(var + jnp.float32(1e-5)) * gamma + beta

    # --- gating logits: wg (Linear, no bias), fp32 ---
    logits = jnp.dot(h, wg, preferred_element_type=jnp.float32)           # [ts, E]

    ts = logits.shape[0]
    E = logits.shape[-1]
    col = lax.broadcasted_iota(jnp.int32, logits.shape, 1)

    # --- top-2 selection (tie-break: lowest index, like sorted torch.topk) ---
    m1 = jnp.max(logits, axis=-1, keepdims=True)                          # [ts, 1]
    idx1 = jnp.min(jnp.where(logits == m1, col, jnp.int32(E)),
                   axis=-1, keepdims=True)                                # [ts, 1]
    mask1 = (col == idx1)
    logits2 = jnp.where(mask1, -jnp.inf, logits)
    m2 = jnp.max(logits2, axis=-1, keepdims=True)
    idx2 = jnp.min(jnp.where(logits2 == m2, col, jnp.int32(E)),
                   axis=-1, keepdims=True)                                # [ts, 1]

    # --- closed-form renormalized top-2 gates ---
    # softmax denominator cancels in g1/(g1+g2); with e1 = exp(m1-m1) = 1 and
    # e2 = exp(m2-m1):  g1 = 1/(1+e2), g2 = e2/(1+e2).  The PyTorch eps clamp is
    # a no-op here since 1+e2 >= 1 (semantic drift only in the clamp, not values).
    e2 = jnp.exp(m2 - m1)                                                 # [ts, 1]
    g1 = pl.reciprocal(1.0 + e2)                                          # exact divide
    g2 = e2 * g1

    # --- packed output block: [ts, 8] f32 (32 B/token writeback) ---
    #   lane 0: idx1 (as float, exact for E < 2^24), lane 1: idx2,
    #   lane 2: g1,  lane 3: g2,  lanes 4..7: 0
    lanes = lax.broadcasted_iota(jnp.int32, (ts, 8), 1)
    packed = jnp.where(
        lanes == 0, idx1.astype(jnp.float32),
        jnp.where(lanes == 1, idx2.astype(jnp.float32),
                  jnp.where(lanes == 2, g1,
                            jnp.where(lanes == 3, g2, jnp.float32(0.0)))))
    out_ref[...] = packed


def _vmem_budget_bytes():
    """Generation-aware VMEM budget (per TensorCore)."""
    cap = 64 * 1024 * 1024  # safe fallback (v7x per-TC physical)
    try:
        cap = int(pltpu.get_tpu_info().vmem_capacity_bytes)
    except Exception:
        pass
    # Use <~40% of physical VMEM: v7x (64 MiB/TC) -> ~25 MiB, v5e/v6e (128 MiB) -> 48 MiB.
    return int(min(cap * 2 // 5, 48 * 1024 * 1024))


def _pick_tile_s(S, A, D, E, budget_bytes):
    """Token-tile size: as big as fits the budget, counting the double-buffered
    x tile + output block (lane-padded), resident weights (counted double
    buffered to be safe) and the [ts,D]/[ts,E] fp32 intermediates. Forces >=2
    grid steps when S > 256 so both v7x TensorCores get work."""
    bpe = 4
    weights = 2 * (A * D + 8 * D + D * E) * bpe
    per_row = (2 * A * bpe          # x tile, double-buffered (<= 4 B/elem)
               + 2 * 128 * bpe      # (ts,8) output block, lane-padded to 128, x2
               + 4 * D * bpe        # h / erf / centered / normalized temporaries
               + 3 * E * bpe        # logits + masked copy + iota
               + 16 * bpe)          # per-row scalars (m1, m2, idx, gates)
    avail = budget_bytes - weights - (1 << 20)   # 1 MiB headroom
    max_rows = max(8, avail // per_row)
    ts = int(min(max_rows, 1024, S))
    if S > 256:
        half = -(-S // 2)                         # cdiv(S, 2)
        ts = min(ts, ((half + 127) // 128) * 128)
    if ts < S:
        ts = max(128, (ts // 128) * 128)          # 128-multiple partial-grid tiles
    return ts


def topk_gate(x, w1, b1, gamma, beta, wg, *, tile_s=None):
    """Returns ([indices1, indices2], [gates1, gates2]) like TopKGate.top2gating (k=2)."""
    S, A = x.shape
    D = w1.shape[1]
    E = wg.shape[1]
    budget = _vmem_budget_bytes()
    ts = _pick_tile_s(S, A, D, E, budget) if tile_s is None else int(tile_s)
    grid = (pl.cdiv(S, ts),)

    # Pack b1 / gamma / beta into one (8, D) constant (rows 0..2 used): one DMA,
    # one padded VMEM buffer instead of three.
    params = jnp.zeros((8, D), jnp.float32)
    params = params.at[0].set(b1.astype(jnp.float32))
    params = params.at[1].set(gamma.astype(jnp.float32))
    params = params.at[2].set(beta.astype(jnp.float32))

    fn = pl.pallas_call(
        _topk_gate_kernel,
        out_shape=jax.ShapeDtypeStruct((S, 8), jnp.float32),
        grid_spec=pltpu.PrefetchScalarGridSpec(
            num_scalar_prefetch=0,
            grid=grid,
            in_specs=[
                pl.BlockSpec((ts, A), lambda i: (i, 0)),   # moe_embedding tile (native dtype)
                pl.BlockSpec((A, D), lambda i: (0, 0)),    # tag_transform Linear weight
                pl.BlockSpec((8, D), lambda i: (0, 0)),    # packed bias/gamma/beta
                pl.BlockSpec((D, E), lambda i: (0, 0)),    # wg weight (no bias)
            ],
            out_specs=pl.BlockSpec((ts, 8), lambda i: (i, 0)),  # small packed output
        ),
        compiler_params=pltpu.CompilerParams(
            dimension_semantics=("parallel",),
            vmem_limit_bytes=int(budget),
        ),
    )
    packed = fn(x, w1, params, wg)

    idx1 = packed[:, 0].astype(jnp.int32)
    idx2 = packed[:, 1].astype(jnp.int32)
    g1 = packed[:, 2]
    g2 = packed[:, 3]
    return ([idx1, idx2], [g1, g2])


def _reference_logits(x, w1, b1, gamma, beta, wg):
    x = x.astype(jnp.float32)
    h = x @ w1.astype(jnp.float32) + b1
    h = jax.nn.gelu(h, approximate=False)
    mean = h.mean(-1, keepdims=True)
    var = ((h - mean) ** 2).mean(-1, keepdims=True)
    h = (h - mean) / jnp.sqrt(var + 1e-5) * gamma + beta
    return h @ wg.astype(jnp.float32)


def _check(S, A, D, E, key, tile_s=None):
    k1, k2, k3, k4 = jax.random.split(key, 4)
    x = jax.random.normal(k1, (S, A), jnp.float32)            # moe_embedding
    w1 = jax.random.normal(k2, (A, D), jnp.float32) * 0.1     # tag_transform Linear
    b1 = jax.random.normal(k3, (D,), jnp.float32) * 0.1
    gamma = jnp.ones((D,), jnp.float32)                       # LayerNorm default init
    beta = jnp.zeros((D,), jnp.float32)
    wg = jax.random.normal(k4, (D, E), jnp.float32) * 0.1     # gate weight, no bias

    (i1, i2), (g1, g2) = topk_gate(x, w1, b1, gamma, beta, wg, tile_s=tile_s)
    jax.block_until_ready([i1, i2, g1, g2])

    # Reference check (tolerant to exact/near ties where either ordering is valid).
    logits = _reference_logits(x, w1, b1, gamma, beta, wg)
    gates = jax.nn.softmax(logits, axis=1)
    rows = jnp.arange(S)
    srt = jnp.sort(logits, axis=1)
    assert bool(jnp.all(i1 != i2))
    assert bool(jnp.all((i1 >= 0) & (i1 < E) & (i2 >= 0) & (i2 < E)))
    assert bool(jnp.allclose(logits[rows, i1], srt[:, -1], atol=1e-4))
    assert bool(jnp.allclose(logits[rows, i2], srt[:, -2], atol=1e-4))
    gr1 = gates[rows, i1]
    gr2 = gates[rows, i2]
    denom = jnp.maximum(gr1 + gr2, jnp.finfo(jnp.float32).eps)
    assert bool(jnp.allclose(g1, gr1 / denom, atol=1e-5))
    assert bool(jnp.allclose(g2, gr2 / denom, atol=1e-5))


if __name__ == "__main__":
    # S tokens, A = cfg.MOE.ATTRIBUTE_LENGTH, D = model_dim, E = num_experts
    key = jax.random.PRNGKey(0)
    kA, kB = jax.random.split(key)

    # TODO(synk): training-only stochastic paths (Gumbel RSample / vmoe normal noise /
    # multiplicative jitter), the k=1 'deepspeed' top1gating branch, the distributed
    # load-balance bookkeeping (all_reduce) and host-side exp_counts / tensorboard
    # logging are omitted (eval-mode top2gating semantics only).

    # Small single-tile case (block == full array dims).
    _check(S=8, A=16, D=32, E=8, key=kA)
    # Multi-tile case with auto tile selection (forced >=2 grid steps, partial last tile).
    _check(S=300, A=16, D=32, E=8, key=kB)
    # Multi-tile case with an explicit 128-row tile (3 grid steps).
    _check(S=300, A=16, D=32, E=8, key=kB, tile_s=128)

    print("KERNEL_OK")
</pallas_src>

<mosaic_0001>
module attributes {stable_mosaic.version = 11 : i64} {
  func.func @_topk_gate_kernel(%arg0: i32, %arg1: memref<8x16xf32, #tpu.memory_space<vmem>>, %arg2: memref<16x32xf32, #tpu.memory_space<vmem>>, %arg3: memref<8x32xf32, #tpu.memory_space<vmem>>, %arg4: memref<32x8xf32, #tpu.memory_space<vmem>>, %arg5: memref<8x8xf32, #tpu.memory_space<vmem>>) attributes {dimension_semantics = [#tpu.dimension_semantics<parallel>], iteration_bounds = array<i64: 1>, scalar_prefetch = 0 : i64, scratch_operands = 0 : i64, tpu.core_type = #tpu.core_type<tc>, window_params = [{transform_indices = @transform_0, window_bounds = array<i64: 8, 16>}, {pipeline_mode = #tpu.pipeline_mode<synchronous>, transform_indices = @transform_1, window_bounds = array<i64: 16, 32>}, {pipeline_mode = #tpu.pipeline_mode<synchronous>, transform_indices = @transform_2, window_bounds = array<i64: 8, 32>}, {pipeline_mode = #tpu.pipeline_mode<synchronous>, transform_indices = @transform_3, window_bounds = array<i64: 32, 8>}, {transform_indices = @transform_4, window_bounds = array<i64: 8, 8>}]} {
    %c0 = arith.constant 0 : index
    %c0_0 = arith.constant 0 : index
    %0 = vector.load %arg1[%c0, %c0_0] : memref<8x16xf32, #tpu.memory_space<vmem>>, vector<8x16xf32>
    %c0_1 = arith.constant 0 : index
    %c0_2 = arith.constant 0 : index
    %1 = vector.load %arg2[%c0_1, %c0_2] : memref<16x32xf32, #tpu.memory_space<vmem>>, vector<16x32xf32>
    %c0_3 = arith.constant 0 : index
    %c0_4 = arith.constant 0 : index
    %2 = vector.load %arg4[%c0_3, %c0_4] : memref<32x8xf32, #tpu.memory_space<vmem>>, vector<32x8xf32>
    %c0_5 = arith.constant 0 : index
    %c0_6 = arith.constant 0 : index
    %3 = vector.load %arg3[%c0_5, %c0_6] : memref<8x32xf32, #tpu.memory_space<vmem>>, vector<1x32xf32>
    %c1 = arith.constant 1 : index
    %c0_7 = arith.constant 0 : index
    %4 = vector.load %arg3[%c1, %c0_7] : memref<8x32xf32, #tpu.memory_space<vmem>>, vector<1x32xf32>
    %c2 = arith.constant 2 : index
    %c0_8 = arith.constant 0 : index
    %5 = vector.load %arg3[%c2, %c0_8] : memref<8x32xf32, #tpu.memory_space<vmem>>, vector<1x32xf32>
    %cst = arith.constant dense<0.000000e+00> : vector<8x32xf32>
    %6 = tpu.matmul %0, %1, %cst {dimension_numbers = #tpu.dot_dimension_numbers<[1], [0], [0], [1], [0, 0, 1, 1], [], []>} : vector<8x16xf32>, vector<16x32xf32>, vector<8x32xf32> -> vector<8x32xf32>
    %7 = vector.broadcast %3 : vector<1x32xf32> to vector<8x32xf32>
    %8 = arith.addf %6, %7 : vector<8x32xf32>
    %cst_9 = arith.constant 5.000000e-01 : f32
    %9 = vector.broadcast %cst_9 : f32 to vector<8x32xf32>
    %10 = arith.mulf %9, %8 : vector<8x32xf32>
    %cst_10 = arith.constant 0.707106769 : f32
    %11 = vector.broadcast %cst_10 : f32 to vector<8x32xf32>
    %12 = arith.mulf %8, %11 : vector<8x32xf32>
    %13 = math.erf %12 : vector<8x32xf32>
    %cst_11 = arith.constant 1.000000e+00 : f32
    %14 = vector.broadcast %cst_11 : f32 to vector<8x32xf32>
    %15 = arith.addf %14, %13 : vector<8x32xf32>
    %16 = arith.mulf %10, %15 : vector<8x32xf32>
    %cst_12 = arith.constant dense<0.000000e+00> : vector<8xf32>
    %17 = vector.multi_reduction <add>, %16, %cst_12 [1] : vector<8x32xf32> to vector<8xf32>
    %18 = vector.shape_cast %17 : vector<8xf32> to vector<8x1xf32>
    %cst_13 = arith.constant 3.200000e+01 : f32
    %19 = vector.broadcast %cst_13 : f32 to vector<8x1xf32>
    %20 = arith.divf %18, %19 : vector<8x1xf32>
    %21 = vector.broadcast %20 : vector<8x1xf32> to vector<8x32xf32>
    %22 = arith.subf %16, %21 : vector<8x32xf32>
    %23 = arith.mulf %22, %22 : vector<8x32xf32>
    %cst_14 = arith.constant dense<0.000000e+00> : vector<8xf32>
    %24 = vector.multi_reduction <add>, %23, %cst_14 [1] : vector<8x32xf32> to vector<8xf32>
    %25 = vector.shape_cast %24 : vector<8xf32> to vector<8x1xf32>
    %cst_15 = arith.constant 3.200000e+01 : f32
    %26 = vector.broadcast %cst_15 : f32 to vector<8x1xf32>
    %27 = arith.divf %25, %26 : vector<8x1xf32>
    %cst_16 = arith.constant 9.99999974E-6 : f32
    %28 = vector.broadcast %cst_16 : f32 to vector<8x1xf32>
    %29 = arith.addf %27, %28 : vector<8x1xf32>
    %30 = math.rsqrt %29 : vector<8x1xf32>
    %31 = vector.broadcast %30 : vector<8x1xf32> to vector<8x32xf32>
    %32 = arith.mulf %22, %31 : vector<8x32xf32>
    %33 = vector.broadcast %4 : vector<1x32xf32> to vector<8x32xf32>
    %34 = arith.mulf %32, %33 : vector<8x32xf32>
    %35 = vector.broadcast %5 : vector<1x32xf32> to vector<8x32xf32>
    %36 = arith.addf %34, %35 : vector<8x32xf32>
    %cst_17 = arith.constant dense<0.000000e+00> : vector<8x8xf32>
    %37 = tpu.matmul %36, %2, %cst_17 {dimension_numbers = #tpu.dot_dimension_numbers<[1], [0], [0], [1], [0, 0, 1, 1], [], []>} : vector<8x32xf32>, vector<32x8xf32>, vector<8x8xf32> -> vector<8x8xf32>
    %38 = tpu.iota {dimensions = array<i32: 1>} : vector<8x8xi32>
    %cst_18 = arith.constant dense<0xFF800000> : vector<8xf32>
    %39 = vector.multi_reduction <maximumf>, %37, %cst_18 [1] : vector<8x8xf32> to vector<8xf32>
    %40 = vector.shape_cast %39 : vector<8xf32> to vector<8x1xf32>
    %41 = vector.broadcast %40 : vector<8x1xf32> to vector<8x8xf32>
    %42 = arith.cmpf oeq, %37, %41 : vector<8x8xf32>
    %c8_i32 = arith.constant 8 : i32
    %43 = vector.broadcast %c8_i32 : i32 to vector<8x8xi32>
    %44 = arith.select %42, %38, %43 : vector<8x8xi1>, vector<8x8xi32>
    %cst_19 = arith.constant dense<2147483647> : vector<8xi32>
    %45 = vector.multi_reduction <minsi>, %44, %cst_19 [1] : vector<8x8xi32> to vector<8xi32>
    %46 = vector.shape_cast %45 : vector<8xi32> to vector<8x1xi32>
    %47 = vector.broadcast %46 : vector<8x1xi32> to vector<8x8xi32>
    %48 = arith.cmpi eq, %38, %47 : vector<8x8xi32>
    %cst_20 = arith.constant 0xFF800000 : f32
    %49 = vector.broadcast %cst_20 : f32 to vector<8x8xf32>
    %50 = arith.select %48, %49, %37 : vector<8x8xi1>, vector<8x8xf32>
    %cst_21 = arith.constant dense<0xFF800000> : vector<8xf32>
    %51 = vector.multi_reduction <maximumf>, %50, %cst_21 [1] : vector<8x8xf32> to vector<8xf32>
    %52 = vector.shape_cast %51 : vector<8xf32> to vector<8x1xf32>
    %53 = vector.broadcast %52 : vector<8x1xf32> to vector<8x8xf32>
    %54 = arith.cmpf oeq, %50, %53 : vector<8x8xf32>
    %c8_i32_22 = arith.constant 8 : i32
    %55 = vector.broadcast %c8_i32_22 : i32 to vector<8x8xi32>
    %56 = arith.select %54, %38, %55 : vector<8x8xi1>, vector<8x8xi32>
    %cst_23 = arith.constant dense<2147483647> : vector<8xi32>
    %57 = vector.multi_reduction <minsi>, %56, %cst_23 [1] : vector<8x8xi32> to vector<8xi32>
    %58 = vector.shape_cast %57 : vector<8xi32> to vector<8x1xi32>
    %59 = arith.subf %52, %40 : vector<8x1xf32>
    %60 = math.exp %59 : vector<8x1xf32>
    %cst_24 = arith.constant 1.000000e+00 : f32
    %61 = vector.broadcast %cst_24 : f32 to vector<8x1xf32>
    %62 = arith.addf %61, %60 : vector<8x1xf32>
    %63 = tpu.reciprocal %62 : vector<8x1xf32> -> vector<8x1xf32>
    %64 = arith.mulf %60, %63 : vector<8x1xf32>
    %65 = tpu.iota {dimensions = array<i32: 1>} : vector<8x8xi32>
    %c0_i32 = arith.constant 0 : i32
    %66 = vector.broadcast %c0_i32 : i32 to vector<8x8xi32>
    %67 = arith.cmpi eq, %65, %66 : vector<8x8xi32>
    %68 = arith.sitofp %46 : vector<8x1xi32> to vector<8x1xf32>
    %c1_i32 = arith.constant 1 : i32
    %69 = vector.broadcast %c1_i32 : i32 to vector<8x8xi32>
    %70 = arith.cmpi eq, %65, %69 : vector<8x8xi32>
    %71 = arith.sitofp %58 : vector<8x1xi32> to vector<8x1xf32>
    %c2_i32 = arith.constant 2 : i32
    %72 = vector.broadcast %c2_i32 : i32 to vector<8x8xi32>
    %73 = arith.cmpi eq, %65, %72 : vector<8x8xi32>
    %c3_i32 = arith.constant 3 : i32
    %74 = vector.broadcast %c3_i32 : i32 to vector<8x8xi32>
    %75 = arith.cmpi eq, %65, %74 : vector<8x8xi32>
    %cst_25 = arith.constant 0.000000e+00 : f32
    %76 = vector.shape_cast %64 : vector<8x1xf32> to vector<8x1xf32>
    %77 = vector.broadcast %76 : vector<8x1xf32> to vector<8x8xf32>
    %78 = vector.broadcast %cst_25 : f32 to vector<8x8xf32>
    %79 = arith.select %75, %77, %78 : vector<8x8xi1>, vector<8x8xf32>
    %80 = vector.shape_cast %63 : vector<8x1xf32> to vector<8x1xf32>
    %81 = vector.broadcast %80 : vector<8x1xf32> to vector<8x8xf32>
    %82 = arith.select %73, %81, %79 : vector<8x8xi1>, vector<8x8xf32>
    %83 = vector.shape_cast %71 : vector<8x1xf32> to vector<8x1xf32>
    %84 = vector.broadcast %83 : vector<8x1xf32> to vector<8x8xf32>
    %85 = arith.select %70, %84, %82 : vector<8x8xi1>, vector<8x8xf32>
    %86 = vector.shape_cast %68 : vector<8x1xf32> to vector<8x1xf32>
    %87 = vector.broadcast %86 : vector<8x1xf32> to vector<8x8xf32>
    %88 = arith.select %67, %87, %85 : vector<8x8xi1>, vector<8x8xf32>
    %c0_26 = arith.constant 0 : index
    %c0_27 = arith.constant 0 : index
    %89 = vector.load %arg5[%c0_26, %c0_27] : memref<8x8xf32, #tpu.memory_space<vmem>>, vector<8x8xf32>
    tpu.vector_store %arg5[%c0_26, %c0_27], %88 {strides = array<i32>} : memref<8x8xf32, #tpu.memory_space<vmem>>, vector<8x8xf32>,
    return
  }
  func.func @transform_0(%arg0: i32) -> (i32, i32) {
    %c0_i32 = arith.constant 0 : i32
    %c0_i32_0 = arith.constant 0 : i32
    return %arg0, %c0_i32 : i32, i32
  }
  func.func @transform_1(%arg0: i32) -> (i32, i32) {
    %c0_i32 = arith.constant 0 : i32
    %c0_i32_0 = arith.constant 0 : i32
    %c0_i32_1 = arith.constant 0 : i32
    return %c0_i32, %c0_i32_0 : i32, i32
  }
  func.func @transform_2(%arg0: i32) -> (i32, i32) {
    %c0_i32 = arith.constant 0 : i32
    %c0_i32_0 = arith.constant 0 : i32
    %c0_i32_1 = arith.constant 0 : i32
    return %c0_i32, %c0_i32_0 : i32, i32
  }
  func.func @transform_3(%arg0: i32) -> (i32, i32) {
    %c0_i32 = arith.constant 0 : i32
    %c0_i32_0 = arith.constant 0 : i32
    %c0_i32_1 = arith.constant 0 : i32
    return %c0_i32, %c0_i32_0 : i32, i32
  }
  func.func @transform_4(%arg0: i32) -> (i32, i32) {
    %c0_i32 = arith.constant 0 : i32
    %c0_i32_0 = arith.constant 0 : i32
    return %arg0, %c0_i32 : i32, i32
  }
}

</mosaic_0001>

<bundles_post_ra>
// kernel: tpu_custom_call.1
= control target key start
LH: loop header
LB: loop body
LE: loop exit
PB: predicated region body
PF: predicated region fallthrough
CT: control target
= control target key end

     0   :  { %v361_v2 = vmov 0.0|0.0   ;;  %vm362_vm0 = vmmov 0   ;;  %v363_v4 = vmov 0.0   ;;  %s449_s0 = inlined_call_operand.vmem [shape: f32[8,16], index: 0, kind: input, shape index: {}]   ;;  %s450_s1 = inlined_call_operand.vmem [shape: f32[16,32], index: 1, kind: input, shape index: {}]   ;;  %s451_s2 = inlined_call_operand.vmem [shape: f32[8,32], index: 2, kind: input, shape index: {}]   ;;  %s452_s3 = inlined_call_operand.vmem [shape: f32[32,8], index: 3, kind: input, shape index: {}]   ;;  %s453_s4 = inlined_call_operand.hbm [shape: f32[8,8], index: 4, kind: output, shape index: {}]  }
   0x1   :  { %v19_v0 = vld [vmem:[%s450_s1] sm:$0xff]  ;;  %v20_v1 = vld [vmem:[%s450_s1 + $0x8] sm:$0xff]  ;;  %316 = vmatprep.subr.bf16.mxu0 %v361_v2  ;;  %302 = vmatprep.mubr.msk.f32.mxu0 %vm362_vm0, %v363_v4 }
   0x2   :  { %v317_v3 = vpack.c.bf16 %v20_v1, %v19_v0 }
   0x3   :  { %9 = vsyncpa [#allocation3], 0  ;;  %319 = vmatprep.subr.bf16.mxu1 %v361_v2  ;;  %313 = vmatprep.mubr.msk.f32.mxu1 %vm362_vm0, %v363_v4  ;;  %v18_v5 = vld [vmem:[%s449_s0] sm:$0xff]  ;;  %vm32_vm1 = vcmask 130048   ;;  %vm111_vm2 = vcmask 261120   ;;  %v22_v22 = vld [vmem:[%s452_s3 + $0x8] sm:$0xff]  ;;  %v209_v39 = vlaneseq }
   0x4   :  { %318 = vmatpush3.bf16.msra.mxu0 %v317_v3  ;;  %v285_v6 = vld [vmem:[%s451_s2] ss:$0 sm:$0xff]  ;;  %v23_v23 = vld [vmem:[%s452_s3 + $0x10] sm:$0xff]  ;;  %v24_v25 = vld [vmem:[%s452_s3 + $0x18] sm:$0xff]  ;;  %vm211_vm3 = vcmask 64512  }
   0x5   :  { %v21_v21 = vld [vmem:[%s452_s3] sm:$0xff]  ;;  %v323_v26 = vpack.c.bf16 %v24_v25, %v23_v23  ;;  %v424_v40 = vand.u32 127, %v209_v39 }
   0x6   :  { %v320_v24 = vpack.c.bf16 %v22_v22, %v21_v21  ;;  %v287_v31 = vld [vmem:[%s451_s2 + $0x1] ss:$0 sm:$0xff]  ;;  %v288_v33 = vld [vmem:[%s451_s2 + $0x2] ss:$0 sm:$0xff]  ;;  %s364_s2 = smov [#allocation2]  }
   0x7   :  { %303 = vmatmul.mubr.msk.f32.vlgmr.msra.gmra.mrb[0].mxu0 %vm32_vm1, %v18_v5  ;;  %vm265_vm9 = vcmp.eq.s32.totalorder %v424_v40, 3  ;;  %vm264_vm10 = vcmp.eq.s32.totalorder %v424_v40, 2  ;;  %vm262_vm11 = vcmp.eq.s32.totalorder %v424_v40, 1  ;;  %s277_s3 = sshll.u32 %s364_s2, 4  ;;  %vm260_vm12 = vcmp.eq.s32.totalorder %v424_v40, 0  ;;  %s278_s3 = int_to_ptr.vmem [resolvable:$true] %s277_s3 }
   0x8   :  { %321 = vmatpush3.bf16.msra.mxu1 %v320_v24  ;;  %s337_s7 = scalar_lea.vmem %s278_s3, 128  ;;  %p342_p1 = scmp.lt.s32.totalorder %s278_s3, %s278_s3 }
   0x9   :  { %322 = vmatprep.subr.bf16.mxu1 %v361_v2  ;;  %p338_p0 = scmp.ne.s32.totalorder %s278_s3, %s337_s7  ;;  %p343_p2 = scmp.lt.s32.totalorder %s337_s7, %s337_s7 }
   0xb   :  { %p344_p3 = por %p343_p2, %p342_p1 }
   0xc   :  { %324 = vmatpush3.bf16.msra.mxu1 %v323_v26 }
   0xd   :  { %p345_p4 = pnand %p344_p3, %p338_p0 }
  0xda   :  { %v102_v7 = vpop.f32.mrb[0].mxu0 }
  0xdb   :  { %v103_v8 = vadd.f32 %v285_v6, %v102_v7  ;;  %v304_v9 = vpop.f32.mrb[1].mxu0 }
  0xdd   :  { %v107_v10 = vmul.f32 0.70710677, %v103_v8  ;;  %v106_v12 = vmul.f32 0.5, %v103_v8 }
  0xdf   :  { %329 = verf.f32 %v107_v10 }
  0xe9   :  { %v330_v11 = vpop.eup %329 }
  0xea   :  { %v109_v13 = vadd.f32 1.0, %v330_v11 }
  0xec   :  { %v110_v14 = vmul.f32 %v109_v13, %v106_v12 }
  0xee   :  { %v112_v15 = vsel %vm111_vm2, %v110_v14, 0.0 }
  0xef   :  { %113 = vadd.xlane.f32.xlu0 %v112_v15 }
 0x17c   :  { %v114_v16 = vpop.xlane.xlu0 %113 }
 0x17d   :  { %v116_v17 = vmul.f32 0.03125, %v114_v16 }
 0x17f   :  { %v117_v18 = vsub.f32 %v110_v14, %v116_v17 }
 0x181   :  { %v118_v19 = vmul.f32 %v117_v18, %v117_v18 }
 0x183   :  { %v119_v20 = vsel %vm111_vm2, %v118_v19, 0.0 }
 0x184   :  { %120 = vadd.xlane.f32.xlu0 %v119_v20 }
 0x211   :  { %v121_v27 = vpop.xlane.xlu0 %120 }
 0x212   :  { %v122_v28 = vmul.f32 0.03125, %v121_v27 }
 0x214   :  { %v123_v29 = vadd.f32 1e-05, %v122_v28 }
 0x216   :  { %331 = vrsqrt.f32 %v123_v29 }
 0x220   :  { %v332_v30 = vpop.eup %331 }
 0x221   :  { %v125_v32 = vmul.f32 %v332_v30, %v117_v18 }
 0x223   :  { %v130_v34 = vmul.f32 %v287_v31, %v125_v32 }
 0x225   :  { %v135_v35 = vadd.f32 %v288_v33, %v130_v34 }
 0x227   :  { %314 = vmatmul.mubr.msk.f32.vlgmr.msra.gmra.mrb[0].mxu1 %vm111_vm2, %v135_v35 }
 0x2fa   :  { %v205_v36 = vpop.f32.mrb[0].mxu1 }
 0x2fb   :  { %v315_v37 = vpop.f32.mrb[1].mxu1  ;;  %v212_v38 = vsel %vm211_vm3, %v205_v36, -inf }
 0x2fc   :  { %213 = vmax.xlane.f32.xlu1 %v212_v38 }
 0x389   :  { %v214_v41 = vpop.xlane.xlu1 %213 }
 0x38a   :  { %vm215_vm4 = vcmp.eq.f32.partialorder %v205_v36, %v214_v41 }
 0x38b   :  { %v216_v42 = vsel %vm215_vm4, %v424_v40, 8 }
 0x38c   :  { %v217_v43 = vsel %vm211_vm3, %v216_v42, 2147483647 }
 0x38d   :  { %v219_v44 = vshra.s32 %v217_v43, 16  ;;  %v218_v46 = vand.u32 65535, %v217_v43 }
 0x38f   :  { %v221_v45 = vcvt.s32.f32 %v219_v44  ;;  %v220_v48 = vcvt.s32.f32 %v218_v46 }
 0x391   :  { %222 = vmin.xlane.f32.xlu1 %v221_v45 }
 0x41e   :  { %v223_v47 = vpop.xlane.xlu1 %222 }
 0x41f   :  { %vm224_vm5 = vcmp.eq.f32.partialorder %v221_v45, %v223_v47  ;;  %v229_v50 = vcvt.f32.s32 %v223_v47 }
 0x420   :  { %v225_v49 = vsel %vm224_vm5, %v220_v48, inf }
 0x421   :  { %226 = vmin.xlane.f32.xlu0 %v225_v49  ;;  %v230_v52 = vshll.u32 %v229_v50, 16 }
 0x4ae   :  { %v227_v51 = vpop.xlane.xlu0 %226 }
 0x4af   :  { %v228_v53 = vcvt.f32.s32 %v227_v51 }
 0x4b1   :  { %v231_v54 = vadd.s32 %v230_v52, %v228_v53 }
 0x4b3   :  { %vm232_vm6 = vcmp.eq.s32.totalorder %v424_v40, %v231_v54  ;;  %v261_v15 = vcvt.s32.f32 %v231_v54 }
 0x4b4   :  { %v233_v55 = vsel %vm232_vm6, -inf, %v205_v36 }
 0x4b5   :  { %v234_v56 = vsel %vm211_vm3, %v233_v55, -inf }
 0x4b6   :  { %235 = vmax.xlane.f32.xlu1 %v234_v56 }
 0x543   :  { %v236_v57 = vpop.xlane.xlu1 %235 }
 0x544   :  { %vm237_vm7 = vcmp.eq.f32.partialorder %v233_v55, %v236_v57  ;;  %v254_v2 = vsub.f32 %v236_v57, %v214_v41 }
 0x545   :  { %v238_v58 = vsel %vm237_vm7, %v424_v40, 8 }
 0x546   :  { %v239_v59 = vsel %vm211_vm3, %v238_v58, 2147483647  ;;  %v255_v3 = vmul.f32 1.442695, %v254_v2 }
 0x547   :  { %v241_v60 = vshra.s32 %v239_v59, 16  ;;  %v240_v62 = vand.u32 65535, %v239_v59 }
 0x548   :  { %333 = vpow2.f32 %v255_v3 }
 0x549   :  { %v243_v61 = vcvt.s32.f32 %v241_v60  ;;  %v242_v0 = vcvt.s32.f32 %v240_v62 }
 0x54b   :  { %244 = vmin.xlane.f32.xlu0 %v243_v61 }
 0x552   :  { %v334_v4 = vpop.eup %333 }
 0x553   :  { %v257_v5 = vadd.f32 1.0, %v334_v4 }
 0x555   :  { %335 = vrcp.f32 %v257_v5 }
 0x55f   :  { %v336_v6 = vpop.eup %335 }
 0x560   :  { %v259_v8 = vmul.f32 %v336_v6, %v334_v4 }
 0x562   :  { %v266_v13 = vsel %vm265_vm9, %v259_v8, 0.0 }
 0x563   :  { %v267_v16 = vsel %vm264_vm10, %v336_v6, %v266_v13 }
 0x5d8   :  { %v245_v63 = vpop.xlane.xlu0 %244 }
 0x5d9   :  { %vm246_vm8 = vcmp.eq.f32.partialorder %v243_v61, %v245_v63  ;;  %v251_v7 = vcvt.f32.s32 %v245_v63 }
 0x5da   :  { %v247_v1 = vsel %vm246_vm8, %v242_v0, inf }
 0x5db   :  { %248 = vmin.xlane.f32.xlu1 %v247_v1  ;;  %v252_v10 = vshll.u32 %v251_v7, 16 }
 0x668   :  { %v249_v9 = vpop.xlane.xlu1 %248 }
 0x669   :  { %v250_v11 = vcvt.f32.s32 %v249_v9 }
 0x66b   :  { %v253_v12 = vadd.s32 %v252_v10, %v250_v11 }
 0x66d   :  { %v263_v14 = vcvt.s32.f32 %v253_v12 }
 0x66f   :  { %v268_v17 = vsel %vm262_vm11, %v263_v14, %v267_v16 }
 0x670   :  { %v269_v18 = vsel %vm260_vm12, %v261_v15, %v268_v17 }
 0x671   :  { %270 = vst.msk [vmem:[#allocation2] sm:$0xff] %vm211_vm3, %v269_v18 }
 0x672   :  { %348 = shalt.err (!%p345_p4)
}
 0x673   :  { %s349_s10 = scalar_lea.hbm %s453_s4, 128 }
 0x674   :  { %p350_p5 = scmp.ne.s32.totalorder %s453_s4, %s349_s10  ;;  %p353_p6 = scmp.lt.u32.totalorder %s349_s10, %s453_s4 }
 0x676   :  { %p355_p7 = pnand %p353_p6, %p350_p5 }
 0x678   :  { %358 = shalt.err (!%p355_p7)
}
 0x679   :  { %280 = dma.vmem_to_hbm [thread:$0]  %s278_s3, 128, %s453_s4, [#allocation3]  }
 0x67a   :  { %359 = dma.done.wait [#allocation3], 128  }
 0x67b   :  { %360 = vsyncadd [#allocation3], 4294967168 }
 0x67c   :  { %284 = vsyncpa [#allocation3], 1 }

</bundles_post_ra>
